<compile_context>
chip_gen: v6e
topology: v6e:2x2x1
jax: 0.10.0
libtpu: 0.0.40
codegen_flags: <defaults>
</compile_context>

<pallas_src>
import jax
import jax.numpy as jnp
from jax.experimental import pallas as pl
from jax.experimental.pallas import tpu as pltpu


# ----------------------------------------------------------------------------
# helpers
# ----------------------------------------------------------------------------
def _pick_lane_width(total: int, max_c: int = 4096):
    """Largest multiple of 128 that divides `total` and is <= max_c.

    Returns None when total is not a multiple of 128 (lane-dense flat view
    impossible); callers then fall back to the metadata reshape.
    """
    if total % 128 != 0:
        return None
    best = 128
    for mult in range(1, max_c // 128 + 1):
        cand = 128 * mult
        if total % cand == 0:
            best = cand
    return best


def _tile_budget():
    """Generation-aware (tile_bytes, vmem_limit_bytes) for the VMEM-staged copy."""
    vmem_phys = 128 << 20
    try:
        info = pltpu.get_tpu_info()
        vmem_phys = int(getattr(info, "vmem_capacity_bytes", vmem_phys))
    except Exception:
        pass
    if vmem_phys >= (96 << 20):
        # v5e / v6e: 128 MiB physical VMEM -> big tiles, raise scoped limit.
        tile_bytes = 8 << 20          # 4 buffers (2-buf in + 2-buf out) = 32 MiB
        vmem_limit = 64 << 20
    else:
        # v7x: 64 MiB per-TC physical VMEM -> cap tiles, stay under ~40 MiB.
        tile_bytes = 4 << 20          # 4 buffers = 16 MiB
        vmem_limit = 40 << 20
    return tile_bytes, vmem_limit


# ----------------------------------------------------------------------------
# Path A: VMEM-staged tiled identity copy (fusion anchor for future compute).
# ----------------------------------------------------------------------------
def _identity_copy_kernel(x_ref, o_ref):
    # The entire "compute" of a reshape: move the tile through VMEM unchanged.
    o_ref[...] = x_ref[...]


def pallas_copy_reshape_vmem(x: jax.Array, dims, *, tile_rows=None):
    """Materialized reshape via a tiled VMEM-staged copy. Semantics == reshape."""
    out_final = (x.shape[0],) + tuple(dims)
    total = x.size
    C = _pick_lane_width(total)
    if C is None:
        # TODO(synk): totals not divisible by 128 fall back to the metadata reshape.
        return x.reshape(out_final)

    R = total // C
    itemsize = jnp.dtype(x.dtype).itemsize
    tile_bytes, vmem_limit = _tile_budget()
    # Sublane packing: 8 rows for 4-byte, 16 for 2-byte, 32 for 1-byte dtypes.
    sub_align = 8 * max(1, 4 // max(itemsize, 1))

    if tile_rows is None:
        tr = (tile_bytes // (C * itemsize)) // sub_align * sub_align
        tr = max(sub_align, tr)
    else:
        tr = int(tile_rows)
    if tr >= R:
        tr = R  # single full-extent row block (legal via full-dim exception)

    x_flat = x.reshape(R, C)                 # pure metadata: same byte order
    grid = (pl.cdiv(R, tr),)                 # ragged last block is masked by Pallas

    out_flat = pl.pallas_call(
        _identity_copy_kernel,
        out_shape=jax.ShapeDtypeStruct((R, C), x.dtype),
        grid=grid,
        in_specs=[pl.BlockSpec((tr, C), lambda i: (i, 0))],
        out_specs=pl.BlockSpec((tr, C), lambda i: (i, 0)),
        compiler_params=pltpu.CompilerParams(
            dimension_semantics=("parallel",),   # shards rows across v7x's 2 TCs
            vmem_limit_bytes=vmem_limit,
        ),
    )(x_flat)

    return out_flat.reshape(out_final)


# ----------------------------------------------------------------------------
# Path B: direct HBM->HBM DMA copy (no VMEM staging, no vreg traffic).
# ----------------------------------------------------------------------------
def pallas_copy_reshape_dma(x: jax.Array, dims, *, n_chunks: int = 8):
    """Materialized reshape via chunked HBM->HBM DMAs. Semantics == reshape."""
    out_final = (x.shape[0],) + tuple(dims)
    total = x.size
    C = _pick_lane_width(total)
    if C is None:
        # TODO(synk): totals not divisible by 128 fall back to the metadata reshape.
        return x.reshape(out_final)

    R = total // C
    x_flat = x.reshape(R, C)

    # Static chunk plan (Python ints at trace time), 8-row aligned where possible.
    chunk_rows = max(8, -(-R // n_chunks))
    chunk_rows = -(-chunk_rows // 8) * 8
    chunks = []
    r = 0
    while r < R:
        nr = min(chunk_rows, R - r)
        chunks.append((r, nr))
        r += nr

    def kernel(x_hbm, o_hbm, sems):
        cps = []
        for c, (r0, nr) in enumerate(chunks):
            if r0 == 0 and nr == R:
                src, dst = x_hbm, o_hbm               # whole-array single DMA
            else:
                src = x_hbm.at[pl.ds(r0, nr)]
                dst = o_hbm.at[pl.ds(r0, nr)]
            cp = pltpu.make_async_copy(src, dst, sems.at[c])
            cp.start()
            cps.append(cp)
        for cp in cps:
            cp.wait()

    out_flat = pl.pallas_call(
        kernel,
        out_shape=jax.ShapeDtypeStruct((R, C), x.dtype),
        in_specs=[pl.BlockSpec(memory_space=pl.ANY)],
        out_specs=pl.BlockSpec(memory_space=pl.ANY),
        scratch_shapes=[pltpu.SemaphoreType.DMA((len(chunks),))],
    )(x_flat)

    return out_flat.reshape(out_final)


# ----------------------------------------------------------------------------
# Module
# ----------------------------------------------------------------------------
class Reshape:
    """JAX/Pallas equivalent of nnj.Reshape (forward only). _n_params = 0."""

    # Below this many bytes, kernel dispatch dominates; just do the free reshape.
    _SMALL_BYTES = 1 << 20

    def __init__(self, *dims):
        self.dims = dims
        self._n_params = 0

    def __call__(self, x: jax.Array, *, materialize=None) -> jax.Array:
        b = x.shape[0]
        if materialize is None:
            # Best path on every generation: same-byte-order reshape is pure
            # metadata in XLA -- zero HBM traffic, zero kernel launch.
            return x.reshape(b, *self.dims)

        nbytes = x.size * jnp.dtype(x.dtype).itemsize
        if nbytes < self._SMALL_BYTES:
            return x.reshape(b, *self.dims)

        if materialize == "dma":
            return pallas_copy_reshape_dma(x, self.dims)
        return pallas_copy_reshape_vmem(x, self.dims)


# ----------------------------------------------------------------------------
# demo / correctness checks
# ----------------------------------------------------------------------------
if __name__ == "__main__":
    key = jax.random.PRNGKey(0)

    # Small NCHW-style input: (2, 4, 16, 16) -> (2, 16, 64); 4*16*16 == 16*64.
    x = jax.random.normal(key, (2, 4, 16, 16), dtype=jnp.float32)
    module = Reshape(16, 64)
    ref = x.reshape(x.shape[0], 16, 64)

    # 1) Default (recommended) path: pure metadata reshape, no Pallas call.
    out = jax.block_until_ready(module(x))
    assert out.shape == (2, 16, 64), out.shape
    assert out.dtype == x.dtype
    assert jnp.array_equal(out, ref), "metadata reshape mismatch"

    # 2) VMEM-staged Pallas copy on the small input: flat slab (1, 2048),
    #    single full-extent block.
    out_v = jax.block_until_ready(pallas_copy_reshape_vmem(x, (16, 64)))
    assert out_v.shape == (2, 16, 64)
    assert jnp.array_equal(out_v, ref), "Pallas VMEM copy mismatch (small)"

    # 3) HBM->HBM DMA copy on the small input (single whole-array DMA).
    out_d = jax.block_until_ready(pallas_copy_reshape_dma(x, (16, 64)))
    assert out_d.shape == (2, 16, 64)
    assert jnp.array_equal(out_d, ref), "Pallas DMA copy mismatch (small)"

    # 4) Larger input to exercise the tiled + ragged (cdiv-masked) grid:
    #    (2, 64, 32, 32) -> flat slab (32, 4096); tile_rows=24 gives a 2-step
    #    grid whose last block is partial (masked writeback).
    key2 = jax.random.PRNGKey(0)
    x2 = jax.random.normal(key2, (2, 64, 32, 32), dtype=jnp.float32)
    ref2 = x2.reshape(2, 256, 256)

    out2 = jax.block_until_ready(pallas_copy_reshape_vmem(x2, (256, 256), tile_rows=24))
    assert out2.shape == (2, 256, 256)
    assert jnp.array_equal(out2, ref2), "Pallas VMEM copy mismatch (ragged grid)"

    out2_auto = jax.block_until_ready(pallas_copy_reshape_vmem(x2, (256, 256)))
    assert jnp.array_equal(out2_auto, ref2), "Pallas VMEM copy mismatch (auto tile)"

    # 5) DMA path on the larger input: 4 chunked HBM->HBM DMAs in flight.
    out2_d = jax.block_until_ready(pallas_copy_reshape_dma(x2, (256, 256)))
    assert jnp.array_equal(out2_d, ref2), "Pallas DMA copy mismatch (chunked)"

    print("KERNEL_OK")
</pallas_src>

<mosaic_0001>
module attributes {stable_mosaic.version = 11 : i64} {
  func.func @_identity_copy_kernel(%arg0: i32, %arg1: memref<1x2048xf32, #tpu.memory_space<vmem>>, %arg2: memref<1x2048xf32, #tpu.memory_space<vmem>>) attributes {dimension_semantics = [#tpu.dimension_semantics<parallel>], iteration_bounds = array<i64: 1>, scalar_prefetch = 0 : i64, scratch_operands = 0 : i64, tpu.core_type = #tpu.core_type<tc>, window_params = [{transform_indices = @transform_0, window_bounds = array<i64: 1, 2048>}, {transform_indices = @transform_1, window_bounds = array<i64: 1, 2048>}]} {
    %c0 = arith.constant 0 : index
    %c0_0 = arith.constant 0 : index
    %0 = vector.load %arg1[%c0, %c0_0] : memref<1x2048xf32, #tpu.memory_space<vmem>>, vector<1x2048xf32>
    %c0_1 = arith.constant 0 : index
    %c0_2 = arith.constant 0 : index
    %1 = vector.load %arg2[%c0_1, %c0_2] : memref<1x2048xf32, #tpu.memory_space<vmem>>, vector<1x2048xf32>
    tpu.vector_store %arg2[%c0_1, %c0_2], %0 {strides = array<i32>} : memref<1x2048xf32, #tpu.memory_space<vmem>>, vector<1x2048xf32>,
    return
  }
  func.func @transform_0(%arg0: i32) -> (i32, i32) {
    %c0_i32 = arith.constant 0 : i32
    %c0_i32_0 = arith.constant 0 : i32
    return %arg0, %c0_i32 : i32, i32
  }
  func.func @transform_1(%arg0: i32) -> (i32, i32) {
    %c0_i32 = arith.constant 0 : i32
    %c0_i32_0 = arith.constant 0 : i32
    return %arg0, %c0_i32 : i32, i32
  }
}

</mosaic_0001>

<bundles_post_ra>
// kernel: tpu_custom_call.1
= control target key start
LH: loop header
LB: loop body
LE: loop exit
PB: predicated region body
PF: predicated region fallthrough
CT: control target
= control target key end

     0   :  { %6 = vsyncpa [#allocation3], 0  ;;  %s104_s0 = inlined_call_operand.hbm [shape: f32[1,2048], index: 0, kind: input, shape index: {}]   ;;  %s105_s1 = inlined_call_operand.hbm [shape: f32[1,2048], index: 1, kind: output, shape index: {}]  }
   0x1   :  { %7 = vsyncpa [#allocation4], 0  ;;  %s86_s6 = smov [#allocation2]  }
   0x2   :  { %s14_s7 = sshll.u32 %s86_s6, 4  ;;  %s15_s7 = int_to_ptr.vmem [resolvable:$true] %s14_s7 }
   0x3   :  { %s50_s8 = scalar_lea.vmem %s15_s7, 256  ;;  %p55_p1 = scmp.lt.s32.totalorder %s15_s7, %s15_s7 }
   0x4   :  { %p51_p0 = scmp.ne.s32.totalorder %s15_s7, %s50_s8  ;;  %p56_p2 = scmp.lt.s32.totalorder %s50_s8, %s50_s8 }
   0x6   :  { %p57_p3 = por %p56_p2, %p55_p1 }
   0x8   :  { %p58_p4 = pnand %p57_p3, %p51_p0 }
   0xa   :  { %61 = shalt.err (!%p58_p4)
}
   0xb   :  { %17 = dma.hbm_to_vmem [thread:$0]  %s104_s0, 256, %s15_s7, [#allocation3]  }
   0xc   :  { %82 = dma.done.wait [#allocation3], 256  }
   0xd   :  { %83 = vsyncadd [#allocation3], 4294967040  ;;  %s87_s11 = smov [#allocation5]   ;;  %v21_v0 = vld [vmem:[#allocation2] sm:$0xff]  ;;  %v22_v1 = vld [vmem:[#allocation2 + $0x8] sm:$0xff] }
   0xe   :  { %s31_s12 = sshll.u32 %s87_s11, 4  ;;  %23 = vst [vmem:[#allocation5] sm:$0xff] %v21_v0  ;;  %24 = vst [vmem:[#allocation5 + $0x8] sm:$0xff] %v22_v1  ;;  %s32_s12 = int_to_ptr.vmem [resolvable:$true] %s31_s12 }
   0xf   :  { %s62_s13 = scalar_lea.vmem %s32_s12, 256  ;;  %p67_p6 = scmp.lt.s32.totalorder %s32_s12, %s32_s12 }
  0x10   :  { %p63_p5 = scmp.ne.s32.totalorder %s32_s12, %s62_s13  ;;  %p68_p7 = scmp.lt.s32.totalorder %s62_s13, %s62_s13 }
  0x12   :  { %p69_p8 = por %p68_p7, %p67_p6 }
  0x14   :  { %p70_p9 = pnand %p69_p8, %p63_p5 }
  0x16   :  { %73 = shalt.err (!%p70_p9)
}
  0x17   :  { %34 = dma.vmem_to_hbm [thread:$0]  %s32_s12, 256, %s105_s1, [#allocation4]  }
  0x18   :  { %84 = dma.done.wait [#allocation4], 256  }
  0x19   :  { %85 = vsyncadd [#allocation4], 4294967040 }
  0x1a   :  { %38 = vsyncpa [#allocation3], 1 }
  0x1b   :  { %39 = vsyncpa [#allocation4], 1 }

</bundles_post_ra>
